<compile_context>
chip_gen: v7x
topology: tpu7x:2x2x1
jax: 0.10.0
libtpu: 0.0.40
codegen_flags: <defaults>
</compile_context>

<pallas_src>
import jax
import jax.numpy as jnp
from jax.experimental import pallas as pl
from jax.experimental.pallas import tpu as pltpu

_LANE = 128
_SUBLANE = 8


def _make_outconv_kernel(cin, cout):
    def kernel(w_ref, b_ref, x_ref, o_ref):
        # w_ref: SMEM (cout*cin,) f32, row-major [co][ci];  b_ref: SMEM (cout,)
        # x_ref: VMEM (tile_n, cin,  *spatial)   (4-D main path or 3-D ragged path)
        # o_ref: VMEM (tile_n, cout, *spatial)
        # Read each input-channel slab once; it feeds every output channel.
        xs = [x_ref[:, ci] for ci in range(cin)]
        for co in range(cout):
            acc = xs[0] * w_ref[co * cin]
            for ci in range(1, cin):
                acc = acc + xs[ci] * w_ref[co * cin + ci]
            o_ref[:, co] = acc + b_ref[co]
    return kernel


def outconv_forward(x_nchw, weight, bias, *, vmem_budget_bytes=12 * 1024 * 1024):
    """1x1 conv forward, matching torch.nn.Conv2d(Cin, Cout, kernel_size=1).

    x_nchw: (N, Cin, H, W) float32
    weight: (Cout, Cin, 1, 1) float32 (PyTorch layout)
    bias:   (Cout,) float32
    returns (N, Cout, H, W) float32
    """
    N, Cin, H, W = x_nchw.shape
    Cout = weight.shape[0]
    HW = H * W
    itemsize = 4

    w_flat = weight.reshape(Cout * Cin).astype(jnp.float32)   # SMEM scalar table
    b_flat = bias.reshape(Cout).astype(jnp.float32)
    # TODO(synk): bf16 activations would need a 16-row sublane tile and f32
    # params kept in SMEM; only f32 is exercised here (matches the module).

    kernel = _make_outconv_kernel(Cin, Cout)

    if HW % _LANE == 0:
        # Main path: spatial pixels fill both sublanes and lanes (dense vst).
        R = HW // _LANE
        x_in = x_nchw.reshape(N, Cin, R, _LANE)
        # Double-buffered bytes per sublane-row (128 lanes) of input + output.
        row_bytes = 2 * (Cin + Cout) * _LANE * itemsize
        max_rows = max(_SUBLANE,
                       (vmem_budget_bytes // row_bytes) // _SUBLANE * _SUBLANE)
        if N * R <= max_rows:
            tile_n, tile_r = N, R           # whole tensor: single grid step
        elif R <= max_rows:
            tile_n, tile_r = 1, R
        else:
            tile_n, tile_r = 1, max_rows    # multiple of 8; cdiv grid masks tail
        grid = (pl.cdiv(N, tile_n), pl.cdiv(R, tile_r))
        x_spec = pl.BlockSpec((tile_n, Cin, tile_r, _LANE),
                              lambda i, j: (i, 0, j, 0))
        o_spec = pl.BlockSpec((tile_n, Cout, tile_r, _LANE),
                              lambda i, j: (i, 0, j, 0))
        out_struct = jax.ShapeDtypeStruct((N, Cout, R, _LANE), x_nchw.dtype)
        vmem_block_bytes = 2 * (Cin + Cout) * tile_n * tile_r * _LANE * itemsize
    else:
        # Ragged H*W fallback: keep (N, Cin, HW); Pallas masks the partial
        # final lane tile, so no jnp.pad / output slice.  Sublane axis is Cin
        # here (lower vreg occupancy) — acceptable for the fallback path only.
        x_in = x_nchw.reshape(N, Cin, HW)
        col_bytes = 2 * (Cin + Cout) * _LANE * itemsize     # per 128-lane column
        n_cols = pl.cdiv(HW, _LANE)
        max_cols = max(1, vmem_budget_bytes // col_bytes)
        if N * n_cols <= max_cols:
            tile_n, tile_hw = N, HW
        elif n_cols <= max_cols:
            tile_n, tile_hw = 1, HW
        else:
            tile_n, tile_hw = 1, max_cols * _LANE
        grid = (pl.cdiv(N, tile_n), pl.cdiv(HW, tile_hw))
        x_spec = pl.BlockSpec((tile_n, Cin, tile_hw), lambda i, j: (i, 0, j))
        o_spec = pl.BlockSpec((tile_n, Cout, tile_hw), lambda i, j: (i, 0, j))
        out_struct = jax.ShapeDtypeStruct((N, Cout, HW), x_nchw.dtype)
        vmem_block_bytes = (2 * (Cin + Cout) * tile_n
                            * pl.cdiv(tile_hw, _LANE) * _LANE * itemsize)

    cost = pl.CostEstimate(
        flops=2 * N * HW * Cin * Cout,
        transcendentals=0,
        bytes_accessed=itemsize * (N * HW * (Cin + Cout) + Cout * Cin + Cout),
    )

    # Both grid axes are independent -> "parallel" (v7x megacore shards them).
    # For the tiny test shape the grid is (1, 1): one TC streams the 8 KiB.
    cp_kwargs = dict(dimension_semantics=("parallel", "parallel"))
    if vmem_block_bytes > 12 * 1024 * 1024:
        # Only needed when the caller raises the budget beyond v5e's 16 MiB
        # scoped default; keep headroom for Mosaic internal scratch.
        cp_kwargs["vmem_limit_bytes"] = int(vmem_block_bytes + (4 << 20))

    out = pl.pallas_call(
        kernel,
        out_shape=out_struct,
        grid_spec=pltpu.PrefetchScalarGridSpec(
            num_scalar_prefetch=0,
            grid=grid,
            in_specs=[
                pl.BlockSpec(memory_space=pltpu.MemorySpace.SMEM),   # weights
                pl.BlockSpec(memory_space=pltpu.MemorySpace.SMEM),   # bias
                x_spec,                                              # activations
            ],
            out_specs=o_spec,
        ),
        compiler_params=pltpu.CompilerParams(**cp_kwargs),
        cost_estimate=cost,
    )(w_flat, b_flat, x_in)

    return out.reshape(N, Cout, H, W)


if __name__ == "__main__":
    # Module config: in_channels=4, out_channels=3; input (2, 4, 16, 16).
    in_channels, out_channels = 4, 3
    N, H, W = 2, 16, 16

    key = jax.random.PRNGKey(0)
    kx, kw, kb = jax.random.split(key, 3)

    x = jax.random.normal(kx, (N, in_channels, H, W), dtype=jnp.float32)
    # Deterministic param init (mimics Conv2d's uniform range, synthetic).
    fan_in = in_channels  # kernel_size = 1
    bound = 1.0 / (fan_in ** 0.5)
    weight = jax.random.uniform(
        kw, (out_channels, in_channels, 1, 1),
        minval=-bound, maxval=bound, dtype=jnp.float32)
    bias = jax.random.uniform(
        kb, (out_channels,), minval=-bound, maxval=bound, dtype=jnp.float32)

    y = outconv_forward(x, weight, bias)
    y = jax.block_until_ready(y)

    # Reference check against plain JAX (same math as torch Conv2d k=1).
    y_ref = jnp.einsum("nihw,oi->nohw", x,
                       weight.reshape(out_channels, in_channels))
    y_ref = y_ref + bias.reshape(1, out_channels, 1, 1)
    assert y.shape == (N, out_channels, H, W)
    assert jnp.allclose(y, y_ref, atol=1e-5, rtol=1e-5)

    print("KERNEL_OK")
</pallas_src>

<mosaic_0001>
module attributes {stable_mosaic.version = 11 : i64} {
  func.func @kernel(%arg0: i32, %arg1: i32, %arg2: memref<12xf32, #tpu.memory_space<smem>>, %arg3: memref<3xf32, #tpu.memory_space<smem>>, %arg4: memref<2x4x2x128xf32, #tpu.memory_space<vmem>>, %arg5: memref<2x3x2x128xf32, #tpu.memory_space<vmem>>) attributes {dimension_semantics = [#tpu.dimension_semantics<parallel>, #tpu.dimension_semantics<parallel>], iteration_bounds = array<i64: 1, 1>, scalar_prefetch = 0 : i64, scratch_operands = 0 : i64, tpu.core_type = #tpu.core_type<tc>, window_params = [{transform_indices = @transform_0, window_bounds = array<i64: 12>}, {transform_indices = @transform_1, window_bounds = array<i64: 3>}, {transform_indices = @transform_2, window_bounds = array<i64: 2, 4, 2, 128>}, {transform_indices = @transform_3, window_bounds = array<i64: 2, 3, 2, 128>}]} {
    %c0 = arith.constant 0 : index
    %c0_0 = arith.constant 0 : index
    %c0_1 = arith.constant 0 : index
    %c0_2 = arith.constant 0 : index
    %0 = vector.load %arg4[%c0, %c0_0, %c0_1, %c0_2] : memref<2x4x2x128xf32, #tpu.memory_space<vmem>>, vector<2x1x2x128xf32>
    %1 = vector.shape_cast %0 : vector<2x1x2x128xf32> to vector<2x2x128xf32>
    %c0_3 = arith.constant 0 : index
    %c1 = arith.constant 1 : index
    %c0_4 = arith.constant 0 : index
    %c0_5 = arith.constant 0 : index
    %2 = vector.load %arg4[%c0_3, %c1, %c0_4, %c0_5] : memref<2x4x2x128xf32, #tpu.memory_space<vmem>>, vector<2x1x2x128xf32>
    %3 = vector.shape_cast %2 : vector<2x1x2x128xf32> to vector<2x2x128xf32>
    %c0_6 = arith.constant 0 : index
    %c2 = arith.constant 2 : index
    %c0_7 = arith.constant 0 : index
    %c0_8 = arith.constant 0 : index
    %4 = vector.load %arg4[%c0_6, %c2, %c0_7, %c0_8] : memref<2x4x2x128xf32, #tpu.memory_space<vmem>>, vector<2x1x2x128xf32>
    %5 = vector.shape_cast %4 : vector<2x1x2x128xf32> to vector<2x2x128xf32>
    %c0_9 = arith.constant 0 : index
    %c3 = arith.constant 3 : index
    %c0_10 = arith.constant 0 : index
    %c0_11 = arith.constant 0 : index
    %6 = vector.load %arg4[%c0_9, %c3, %c0_10, %c0_11] : memref<2x4x2x128xf32, #tpu.memory_space<vmem>>, vector<2x1x2x128xf32>
    %7 = vector.shape_cast %6 : vector<2x1x2x128xf32> to vector<2x2x128xf32>
    %c0_12 = arith.constant 0 : index
    %8 = memref.load %arg2[%c0_12] : memref<12xf32, #tpu.memory_space<smem>>
    %9 = vector.broadcast %8 : f32 to vector<2x2x128xf32>
    %10 = arith.mulf %1, %9 : vector<2x2x128xf32>
    %c1_13 = arith.constant 1 : index
    %11 = memref.load %arg2[%c1_13] : memref<12xf32, #tpu.memory_space<smem>>
    %12 = vector.broadcast %11 : f32 to vector<2x2x128xf32>
    %13 = arith.mulf %3, %12 : vector<2x2x128xf32>
    %14 = arith.addf %10, %13 : vector<2x2x128xf32>
    %c2_14 = arith.constant 2 : index
    %15 = memref.load %arg2[%c2_14] : memref<12xf32, #tpu.memory_space<smem>>
    %16 = vector.broadcast %15 : f32 to vector<2x2x128xf32>
    %17 = arith.mulf %5, %16 : vector<2x2x128xf32>
    %18 = arith.addf %14, %17 : vector<2x2x128xf32>
    %c3_15 = arith.constant 3 : index
    %19 = memref.load %arg2[%c3_15] : memref<12xf32, #tpu.memory_space<smem>>
    %20 = vector.broadcast %19 : f32 to vector<2x2x128xf32>
    %21 = arith.mulf %7, %20 : vector<2x2x128xf32>
    %22 = arith.addf %18, %21 : vector<2x2x128xf32>
    %c0_16 = arith.constant 0 : index
    %23 = memref.load %arg3[%c0_16] : memref<3xf32, #tpu.memory_space<smem>>
    %24 = vector.broadcast %23 : f32 to vector<2x2x128xf32>
    %25 = arith.addf %22, %24 : vector<2x2x128xf32>
    %c0_17 = arith.constant 0 : index
    %c0_18 = arith.constant 0 : index
    %c0_19 = arith.constant 0 : index
    %c0_20 = arith.constant 0 : index
    %26 = vector.load %arg5[%c0_17, %c0_18, %c0_19, %c0_20] : memref<2x3x2x128xf32, #tpu.memory_space<vmem>>, vector<2x1x2x128xf32>
    %27 = vector.shape_cast %26 : vector<2x1x2x128xf32> to vector<2x2x128xf32>
    %28 = vector.shape_cast %25 : vector<2x2x128xf32> to vector<2x1x2x128xf32>
    tpu.vector_store %arg5[%c0_17, %c0_18, %c0_19, %c0_20], %28 {strides = array<i32>} : memref<2x3x2x128xf32, #tpu.memory_space<vmem>>, vector<2x1x2x128xf32>,
    %c4 = arith.constant 4 : index
    %29 = memref.load %arg2[%c4] : memref<12xf32, #tpu.memory_space<smem>>
    %30 = vector.broadcast %29 : f32 to vector<2x2x128xf32>
    %31 = arith.mulf %1, %30 : vector<2x2x128xf32>
    %c5 = arith.constant 5 : index
    %32 = memref.load %arg2[%c5] : memref<12xf32, #tpu.memory_space<smem>>
    %33 = vector.broadcast %32 : f32 to vector<2x2x128xf32>
    %34 = arith.mulf %3, %33 : vector<2x2x128xf32>
    %35 = arith.addf %31, %34 : vector<2x2x128xf32>
    %c6 = arith.constant 6 : index
    %36 = memref.load %arg2[%c6] : memref<12xf32, #tpu.memory_space<smem>>
    %37 = vector.broadcast %36 : f32 to vector<2x2x128xf32>
    %38 = arith.mulf %5, %37 : vector<2x2x128xf32>
    %39 = arith.addf %35, %38 : vector<2x2x128xf32>
    %c7 = arith.constant 7 : index
    %40 = memref.load %arg2[%c7] : memref<12xf32, #tpu.memory_space<smem>>
    %41 = vector.broadcast %40 : f32 to vector<2x2x128xf32>
    %42 = arith.mulf %7, %41 : vector<2x2x128xf32>
    %43 = arith.addf %39, %42 : vector<2x2x128xf32>
    %c1_21 = arith.constant 1 : index
    %44 = memref.load %arg3[%c1_21] : memref<3xf32, #tpu.memory_space<smem>>
    %45 = vector.broadcast %44 : f32 to vector<2x2x128xf32>
    %46 = arith.addf %43, %45 : vector<2x2x128xf32>
    %c0_22 = arith.constant 0 : index
    %c1_23 = arith.constant 1 : index
    %c0_24 = arith.constant 0 : index
    %c0_25 = arith.constant 0 : index
    %47 = vector.load %arg5[%c0_22, %c1_23, %c0_24, %c0_25] : memref<2x3x2x128xf32, #tpu.memory_space<vmem>>, vector<2x1x2x128xf32>
    %48 = vector.shape_cast %47 : vector<2x1x2x128xf32> to vector<2x2x128xf32>
    %49 = vector.shape_cast %46 : vector<2x2x128xf32> to vector<2x1x2x128xf32>
    tpu.vector_store %arg5[%c0_22, %c1_23, %c0_24, %c0_25], %49 {strides = array<i32>} : memref<2x3x2x128xf32, #tpu.memory_space<vmem>>, vector<2x1x2x128xf32>,
    %c8 = arith.constant 8 : index
    %50 = memref.load %arg2[%c8] : memref<12xf32, #tpu.memory_space<smem>>
    %51 = vector.broadcast %50 : f32 to vector<2x2x128xf32>
    %52 = arith.mulf %1, %51 : vector<2x2x128xf32>
    %c9 = arith.constant 9 : index
    %53 = memref.load %arg2[%c9] : memref<12xf32, #tpu.memory_space<smem>>
    %54 = vector.broadcast %53 : f32 to vector<2x2x128xf32>
    %55 = arith.mulf %3, %54 : vector<2x2x128xf32>
    %56 = arith.addf %52, %55 : vector<2x2x128xf32>
    %c10 = arith.constant 10 : index
    %57 = memref.load %arg2[%c10] : memref<12xf32, #tpu.memory_space<smem>>
    %58 = vector.broadcast %57 : f32 to vector<2x2x128xf32>
    %59 = arith.mulf %5, %58 : vector<2x2x128xf32>
    %60 = arith.addf %56, %59 : vector<2x2x128xf32>
    %c11 = arith.constant 11 : index
    %61 = memref.load %arg2[%c11] : memref<12xf32, #tpu.memory_space<smem>>
    %62 = vector.broadcast %61 : f32 to vector<2x2x128xf32>
    %63 = arith.mulf %7, %62 : vector<2x2x128xf32>
    %64 = arith.addf %60, %63 : vector<2x2x128xf32>
    %c2_26 = arith.constant 2 : index
    %65 = memref.load %arg3[%c2_26] : memref<3xf32, #tpu.memory_space<smem>>
    %66 = vector.broadcast %65 : f32 to vector<2x2x128xf32>
    %67 = arith.addf %64, %66 : vector<2x2x128xf32>
    %c0_27 = arith.constant 0 : index
    %c2_28 = arith.constant 2 : index
    %c0_29 = arith.constant 0 : index
    %c0_30 = arith.constant 0 : index
    %68 = vector.load %arg5[%c0_27, %c2_28, %c0_29, %c0_30] : memref<2x3x2x128xf32, #tpu.memory_space<vmem>>, vector<2x1x2x128xf32>
    %69 = vector.shape_cast %68 : vector<2x1x2x128xf32> to vector<2x2x128xf32>
    %70 = vector.shape_cast %67 : vector<2x2x128xf32> to vector<2x1x2x128xf32>
    tpu.vector_store %arg5[%c0_27, %c2_28, %c0_29, %c0_30], %70 {strides = array<i32>} : memref<2x3x2x128xf32, #tpu.memory_space<vmem>>, vector<2x1x2x128xf32>,
    return
  }
  func.func @transform_0(%arg0: i32, %arg1: i32) -> i32 {
    %c0_i32 = arith.constant 0 : i32
    %c0_i32_0 = arith.constant 0 : i32
    return %c0_i32 : i32
  }
  func.func @transform_1(%arg0: i32, %arg1: i32) -> i32 {
    %c0_i32 = arith.constant 0 : i32
    %c0_i32_0 = arith.constant 0 : i32
    return %c0_i32 : i32
  }
  func.func @transform_2(%arg0: i32, %arg1: i32) -> (i32, i32, i32, i32) {
    %c0_i32 = arith.constant 0 : i32
    %c0_i32_0 = arith.constant 0 : i32
    %c0_i32_1 = arith.constant 0 : i32
    return %arg0, %c0_i32, %arg1, %c0_i32_0 : i32, i32, i32, i32
  }
  func.func @transform_3(%arg0: i32, %arg1: i32) -> (i32, i32, i32, i32) {
    %c0_i32 = arith.constant 0 : i32
    %c0_i32_0 = arith.constant 0 : i32
    %c0_i32_1 = arith.constant 0 : i32
    return %arg0, %c0_i32, %arg1, %c0_i32_0 : i32, i32, i32, i32
  }
}

</mosaic_0001>

<bundles_post_ra>
// kernel: tpu_custom_call.1
= control target key start
LH: loop header
LB: loop body
LE: loop exit
PB: predicated region body
PF: predicated region fallthrough
CT: control target
= control target key end

     0   :  { %8 = vsyncpa [#allocation5], 0  ;;  %s384_s0 = inlined_call_operand.hbm [shape: f32[12], index: 0, kind: input, shape index: {}]   ;;  %s385_s1 = inlined_call_operand.vmem [shape: f32[3], index: 1, kind: input, shape index: {}]   ;;  %s386_s2 = inlined_call_operand.hbm [shape: f32[2,4,2,128], index: 2, kind: input, shape index: {}]   ;;  %s387_s3 = inlined_call_operand.hbm [shape: f32[2,3,2,128], index: 3, kind: output, shape index: {}]  }
   0x1   :  { %9 = vsyncpa [#allocation6], 0 }
   0x2   :  { %10 = vsyncpa [#allocation3], 0 }
   0x3   :  { %11 = vsyncpa [#allocation4], 0  ;;  %s26_s14 = sshll.u32 %s385_s1, 4  ;;  %s187_s17 = scalar_lea.hbm %s384_s0, 16  ;;  %s27_s14 = int_to_ptr.vmem [resolvable:$true] %s26_s14 }
   0x4   :  { %p188_p0 = scmp.ne.s32.totalorder %s384_s0, %s187_s17  ;;  %p191_p1 = scmp.lt.u32.totalorder %s187_s17, %s384_s0 }
   0x6   :  { %p193_p2 = pnand %p191_p1, %p188_p0 }
   0x8   :  { %196 = shalt.err (!%p193_p2)
}
   0x9   :  { %s261_s22 = smov [#allocation2]   ;;  %s197_s1 = scalar_lea.vmem %s27_s14, 16 }
   0xa   :  { %19 = dma.hbm_to_smem %s384_s0, 16, %s261_s22, [#allocation5]  }
   0xb   :  { %p198_p3 = scmp.ne.s32.totalorder %s27_s14, %s197_s1  ;;  %p202_p4 = scmp.lt.s32.totalorder %s27_s14, %s27_s14 }
   0xc   :  { %p203_p5 = scmp.lt.s32.totalorder %s197_s1, %s197_s1 }
   0xe   :  { %p204_p6 = por %p203_p5, %p202_p4 }
  0x10   :  { %p205_p7 = pnand %p204_p6, %p198_p3 }
  0x12   :  { %208 = shalt.err (!%p205_p7)
}
  0x13   :  { %s262_s25 = smov [#allocation7]   ;;  %s263_s26 = smov [#allocation8]  }
  0x14   :  { %29 = dma.vmem_to_smem %s27_s14, 16, %s262_s25, [#allocation6]  }
  0x15   :  { %s35_s27 = sshll.u32 %s263_s26, 4  ;;  %s209_s30 = scalar_lea.hbm %s386_s2, 256  ;;  %s36_s27 = int_to_ptr.vmem [resolvable:$true] %s35_s27 }
  0x16   :  { %p210_p8 = scmp.ne.s32.totalorder %s386_s2, %s209_s30  ;;  %p213_p9 = scmp.lt.u32.totalorder %s209_s30, %s386_s2 }
  0x18   :  { %p215_p10 = pnand %p213_p9, %p210_p8 }
  0x1a   :  { %218 = shalt.err (!%p215_p10)
}
  0x1b   :  { %s219_s7 = scalar_lea.vmem %s36_s27, 256  ;;  %p224_p12 = scmp.lt.s32.totalorder %s36_s27, %s36_s27 }
  0x1c   :  { %p220_p11 = scmp.ne.s32.totalorder %s36_s27, %s219_s7  ;;  %p225_p13 = scmp.lt.s32.totalorder %s219_s7, %s219_s7 }
  0x1e   :  { %p226_p0 = por %p225_p13, %p224_p12 }
  0x20   :  { %p227_p1 = pnand %p226_p0, %p220_p11 }
  0x22   :  { %230 = shalt.err (!%p227_p1)
}
  0x23   :  { %s264_s8 = smov 32   ;;  %s265_s9 = smov 2  }
  0x24   :  { %41 = dma.hbm_to_vmem [thread:$0]  %s386_s2, 256, %s36_s27, [#allocation3], %s264_s8, %s264_s8, %s265_s9  }
  0x25   :  { %253 = dma.done.wait [#allocation5], 16  }
  0x26   :  { %254 = vsyncadd [#allocation5], 4294967280 }
  0x27   :  { %255 = dma.done.wait [#allocation6], 16  }
  0x28   :  { %256 = vsyncadd [#allocation6], 4294967280 }
  0x29   :  { %257 = dma.done.wait [#allocation3], 256  }
  0x2a   :  { %258 = vsyncadd [#allocation3], 4294967040 }
  0x2b   :  { %51 = sfence }
  0x2c   :  { %s63_s12 = sld [smem:[#allocation2]]  ;;  %s317_s13 = sld [smem:[#allocation2 + $0x1]]  ;;  %v52_v0 = vld [vmem:[#allocation8] sm:$0x3]  ;;  %v55_v1 = vld [vmem:[#allocation8 + $0x2] sm:$0x3] }
  0x2d   :  { %s319_s14 = sld [smem:[#allocation2 + $0x2]]  ;;  %s321_s15 = sld [smem:[#allocation2 + $0x3]]  ;;  %v58_v2 = vld [vmem:[#allocation8 + $0x4] sm:$0x3]  ;;  %v325_v3 = vld [vmem:[#allocation8 + $0x6] sm:$0x3] }
  0x2e   :  { %s323_s16 = sld [smem:[#allocation7]]  ;;  %s327_s2 = sld [smem:[#allocation2 + $0x4]]  ;;  %v53_v4 = vld [vmem:[#allocation8 + $0x8] sm:$0x3]  ;;  %v56_v5 = vld [vmem:[#allocation8 + $0xa] sm:$0x3] }
  0x2f   :  { %s329_s17 = sld [smem:[#allocation2 + $0x5]]  ;;  %s331_s18 = sld [smem:[#allocation2 + $0x6]]  ;;  %v59_v6 = vld [vmem:[#allocation8 + $0xc] sm:$0x3]  ;;  %v338_v9 = vld [vmem:[#allocation8 + $0xe] sm:$0x3] }
  0x30   :  { %s333_s19 = sld [smem:[#allocation2 + $0x7]]  ;;  %s335_s20 = sld [smem:[#allocation7 + $0x1]] }
  0x31   :  { %s340_s21 = sld [smem:[#allocation2 + $0x8]]  ;;  %s342_s22 = sld [smem:[#allocation2 + $0x9]] }
  0x32   :  { %v64_v7 = vstv %s63_s12  ;;  %v68_v8 = vstv %s317_s13  ;;  %s348_s23 = sld [smem:[#allocation2 + $0xa]]  ;;  %s350_s24 = sld [smem:[#allocation2 + $0xb]] }
  0x33   :  { %v65_v10 = vmul.f32 %v64_v7, %v52_v0  ;;  %v69_v11 = vmul.f32 %v68_v8, %v55_v1  ;;  %v74_v12 = vstv %s319_s14  ;;  %v80_v13 = vstv %s321_s15  ;;  %s359_s1 = sld [smem:[#allocation7 + $0x2]]  ;;  %s266_s25 = smov [#allocation9]  }
  0x34   :  { %v75_v14 = vmul.f32 %v74_v12, %v58_v2  ;;  %v81_v15 = vmul.f32 %v80_v13, %v325_v3  ;;  %v86_v16 = vstv %s323_s16  ;;  %v66_v17 = vmul.f32 %v64_v7, %v53_v4  ;;  %s154_s26 = sshll.u32 %s266_s25, 4  ;;  %s155_s26 = int_to_ptr.vmem [resolvable:$true] %s154_s26 }
  0x35   :  { %v71_v18 = vadd.f32 %v69_v11, %v65_v10  ;;  %v70_v19 = vmul.f32 %v68_v8, %v56_v5  ;;  %v76_v20 = vmul.f32 %v74_v12, %v59_v6  ;;  %v82_v21 = vmul.f32 %v80_v13, %v338_v9  ;;  %s231_s27 = scalar_lea.vmem %s155_s26, 192  ;;  %p236_p3 = scmp.lt.s32.totalorder %s155_s26, %s155_s26 }
  0x36   :  { %v92_v22 = vstv %s327_s2  ;;  %v96_v23 = vstv %s329_s17  ;;  %v102_v24 = vstv %s331_s18  ;;  %v108_v25 = vstv %s333_s19  ;;  %p232_p2 = scmp.ne.s32.totalorder %s155_s26, %s231_s27  ;;  %p237_p4 = scmp.lt.s32.totalorder %s231_s27, %s231_s27 }
  0x37   :  { %v77_v26 = vadd.f32 %v75_v14, %v71_v18  ;;  %v72_v27 = vadd.f32 %v70_v19, %v66_v17  ;;  %v93_v28 = vmul.f32 %v92_v22, %v52_v0  ;;  %v97_v29 = vmul.f32 %v96_v23, %v55_v1 }
  0x38   :  { %v103_v30 = vmul.f32 %v102_v24, %v58_v2  ;;  %v109_v31 = vmul.f32 %v108_v25, %v325_v3  ;;  %v114_v32 = vstv %s335_s20  ;;  %v94_v33 = vmul.f32 %v92_v22, %v53_v4  ;;  %p238_p5 = por %p237_p4, %p236_p3 }
  0x39   :  { %v83_v34 = vadd.f32 %v81_v15, %v77_v26  ;;  %v78_v35 = vadd.f32 %v76_v20, %v72_v27  ;;  %v99_v36 = vadd.f32 %v97_v29, %v93_v28  ;;  %v98_v37 = vmul.f32 %v96_v23, %v56_v5 }
  0x3a   :  { %v104_v38 = vmul.f32 %v102_v24, %v59_v6  ;;  %v110_v39 = vmul.f32 %v108_v25, %v338_v9  ;;  %v121_v40 = vstv %s340_s21  ;;  %v125_v41 = vstv %s342_s22  ;;  %p239_p6 = pnand %p238_p5, %p232_p2 }
  0x3b   :  { %v87_v42 = vadd.f32 %v86_v16, %v83_v34  ;;  %v84_v43 = vadd.f32 %v82_v21, %v78_v35  ;;  %v105_v44 = vadd.f32 %v103_v30, %v99_v36  ;;  %v100_v45 = vadd.f32 %v98_v37, %v94_v33 }
  0x3c   :  { %v122_v46 = vmul.f32 %v121_v40, %v52_v0  ;;  %v126_v47 = vmul.f32 %v125_v41, %v55_v1  ;;  %v131_v48 = vstv %s348_s23  ;;  %v137_v49 = vstv %s350_s24 }
  0x3d   :  { %89 = vst [vmem:[#allocation9] sm:$0x3] %v87_v42  ;;  %v88_v50 = vadd.f32 %v86_v16, %v84_v43  ;;  %v111_v51 = vadd.f32 %v109_v31, %v105_v44  ;;  %v106_v52 = vadd.f32 %v104_v38, %v100_v45  ;;  %v132_v53 = vmul.f32 %v131_v48, %v58_v2 }
  0x3e   :  { %v128_v54 = vadd.f32 %v126_v47, %v122_v46  ;;  %v138_v55 = vmul.f32 %v137_v49, %v325_v3  ;;  %v123_v56 = vmul.f32 %v121_v40, %v53_v4  ;;  %v127_v59 = vmul.f32 %v125_v41, %v56_v5 }
  0x3f   :  { %90 = vst [vmem:[#allocation9 + $0x6] sm:$0x3] %v88_v50  ;;  %v115_v57 = vadd.f32 %v114_v32, %v111_v51  ;;  %v112_v58 = vadd.f32 %v110_v39, %v106_v52  ;;  %v133_v60 = vmul.f32 %v131_v48, %v59_v6  ;;  %v143_v63 = vstv %s359_s1 }
  0x40   :  { %v134_v61 = vadd.f32 %v132_v53, %v128_v54  ;;  %v129_v0 = vadd.f32 %v127_v59, %v123_v56  ;;  %v139_v1 = vmul.f32 %v137_v49, %v338_v9 }
  0x41   :  { %118 = vst [vmem:[#allocation9 + $0x2] sm:$0x3] %v115_v57  ;;  %v116_v62 = vadd.f32 %v114_v32, %v112_v58 }
  0x42   :  { %v140_v7 = vadd.f32 %v138_v55, %v134_v61  ;;  %v135_v8 = vadd.f32 %v133_v60, %v129_v0 }
  0x43   :  { %119 = vst [vmem:[#allocation9 + $0x8] sm:$0x3] %v116_v62 }
  0x44   :  { %v144_v2 = vadd.f32 %v143_v63, %v140_v7  ;;  %v141_v3 = vadd.f32 %v139_v1, %v135_v8 }
  0x46   :  { %147 = vst [vmem:[#allocation9 + $0x4] sm:$0x3] %v144_v2  ;;  %v145_v4 = vadd.f32 %v143_v63, %v141_v3 }
  0x48   :  { %148 = vst [vmem:[#allocation9 + $0xa] sm:$0x3] %v145_v4 }
  0x49   :  { %242 = shalt.err (!%p239_p6)
}
  0x4a   :  { %s243_s30 = scalar_lea.hbm %s387_s3, 192 }
  0x4b   :  { %p244_p7 = scmp.ne.s32.totalorder %s387_s3, %s243_s30  ;;  %p247_p8 = scmp.lt.u32.totalorder %s243_s30, %s387_s3 }
  0x4d   :  { %p249_p9 = pnand %p247_p8, %p244_p7 }
  0x4f   :  { %252 = shalt.err (!%p249_p9)
}
  0x50   :  { %160 = dma.vmem_to_hbm [thread:$0]  %s155_s26, 192, %s387_s3, [#allocation4], %s264_s8, %s264_s8, %s265_s9  }
  0x51   :  { %259 = dma.done.wait [#allocation4], 192  }
  0x52   :  { %260 = vsyncadd [#allocation4], 4294967104 }
  0x53   :  { %164 = vsyncpa [#allocation3], 1 }
  0x54   :  { %165 = vsyncpa [#allocation4], 1 }
  0x55   :  { %166 = vsyncpa [#allocation5], 1 }
  0x56   :  { %167 = vsyncpa [#allocation6], 1 }

</bundles_post_ra>
